<compile_context>
chip_gen: v6e
topology: v6e:2x2x1
jax: 0.10.0
libtpu: 0.0.40
codegen_flags: <defaults>
</compile_context>

<pallas_src>
import functools

import numpy as np
import jax
import jax.numpy as jnp
from jax.experimental import pallas as pl
from jax.experimental.pallas import tpu as pltpu

EPS = 1e-5
NEG_SLOPE = 0.01  # nn.LeakyReLU default


def _decoder_kernel(x_ref, w_ref, m_ref, gb_ref, o_ref, *,
                    ss, cout, lp, b_tile, inv_count):
    """One (batch-tile, complex-part) grid step.

    x_ref : (1, red, b_tile*lp)      bf16  pre-stacked taps, batch on lanes
    w_ref : (1, ss*cout, red)        bf16  phase-folded weights for this part
    m_ref : (ss, lp)                 f32   per-phase validity mask
    gb_ref: (1, 2, cout, 1)          f32   [gamma; beta] for this part
    o_ref : (b_tile, 1, ss*cout, lp) f32   per-phase channel-stacked output
    """
    # One MXU matmul: every phase x every lane-folded batch element, f32 acc.
    y_all = jnp.dot(w_ref[0], x_ref[0],
                    preferred_element_type=jnp.float32)      # (ss*cout, b_tile*lp)

    mask = m_ref[...]                                        # (ss, lp)
    gam = gb_ref[0, 0]                                       # (cout, 1)
    bet = gb_ref[0, 1]

    for b in range(b_tile):            # static unroll; lane slices 128-aligned
        y = y_all[:, b * lp:(b + 1) * lp]                    # (ss*cout, lp)

        # Single-pass masked InstanceNorm stats.  E[x^2] - mean^2 in f32 has a
        # mild cancellation risk; EPS covers the sign and tolerances hold at
        # these activation magnitudes.
        ssum = jnp.zeros((cout, 1), jnp.float32)
        ssq = jnp.zeros((cout, 1), jnp.float32)
        for p in range(ss):
            blk = y[p * cout:(p + 1) * cout, :]              # (cout, lp)
            bm = blk * mask[p:p + 1, :]
            ssum = ssum + jnp.sum(bm, axis=1, keepdims=True)
            ssq = ssq + jnp.sum(bm * blk, axis=1, keepdims=True)
        mean = ssum * inv_count
        var = ssq * inv_count - mean * mean                  # biased variance
        scale = jax.lax.rsqrt(var + EPS) * gam
        shift = bet - mean * scale

        # Same per-channel affine for every phase block; apply + LeakyReLU on
        # the whole lane-dense slab, one aligned store per batch element.
        scale_f = jnp.concatenate([scale] * ss, axis=0)      # (ss*cout, 1)
        shift_f = jnp.concatenate([shift] * ss, axis=0)
        z = y * scale_f + shift_f
        o_ref[b, 0] = jnp.where(z >= 0, z, NEG_SLOPE * z)


def decoder_forward(x, w_re, w_im, gamma_re, beta_re, gamma_im, beta_im, *, stride):
    """x: (N, Cin, H, W, 2); w_*: (Cin, Cout, K, K) [PyTorch ConvTranspose2d layout]."""
    N, Cin, H, W, _ = x.shape
    _, Cout, K, _ = w_re.shape
    s = int(stride)
    Ho = (H - 1) * s + K
    Wo = (W - 1) * s + K

    qmax = -(-K // s)                     # taps per phase per axis
    rmax = H + qmax - 1                   # = ceil(Ho/s): phase-grid rows
    cmax = W + qmax - 1                   # = ceil(Wo/s): phase-grid cols
    Hp = H + 2 * (qmax - 1)               # padded input (natural pitch, no pow2)
    Wp = W + 2 * (qmax - 1)
    lp_nat = rmax * cmax
    lp = ((lp_nat + 127) // 128) * 128    # lane-dense per-element length
    ss = s * s
    cin2 = 2 * Cin
    red = qmax * qmax * cin2

    # Fold batch onto the lane axis: target ~512 lanes per step.
    b_tile = max(1, min(N, 512 // lp))
    n_steps = -(-N // b_tile)
    n_pad = n_steps * b_tile

    # ---- layout plumbing (XLA): pad, pre-stack the qmax^2 taps, bf16 ----
    xs = jnp.concatenate([x[..., 0], x[..., 1]], axis=1).astype(jnp.bfloat16)
    xpad = jnp.zeros((N, cin2, Hp, Wp), jnp.bfloat16)
    xpad = xpad.at[:, :, qmax - 1:qmax - 1 + H, qmax - 1:qmax - 1 + W].set(xs)
    taps = []
    for dh in range(qmax):
        for dw in range(qmax):
            taps.append(
                xpad[:, :, dh:dh + rmax, dw:dw + cmax].reshape(N, cin2, lp_nat))
    # TODO(synk): on v5e with large Cin, swap this wrapper pre-stack (qmax^2
    # HBM read amplification) for an in-kernel pltpu.roll tap expansion.
    x_taps = jnp.concatenate(taps, axis=1)                     # (N, red, lp_nat)
    x_taps = jnp.pad(x_taps, ((0, n_pad - N), (0, 0), (0, lp - lp_nat)))
    x_taps = x_taps.reshape(n_steps, b_tile, red, lp)
    x_taps = jnp.transpose(x_taps, (0, 2, 1, 3)).reshape(n_steps, red, b_tile * lp)

    # Phase-folded weight matrix per complex part: (2, ss*Cout, red), bf16.
    # real = Wr*xr - Wi*xi ; imag = Wi*xr + Wr*xi  (complex block trick).
    w_re_f = w_re.astype(jnp.float32)
    w_im_f = w_im.astype(jnp.float32)
    zer = jnp.zeros((Cout, Cin), jnp.float32)
    rows_re, rows_im = [], []
    for ph in range(s):
        for pw in range(s):
            cols_re, cols_im = [], []
            for dh in range(qmax):
                for dw in range(qmax):
                    kh = s * (qmax - 1 - dh) + ph
                    kw = s * (qmax - 1 - dw) + pw
                    if kh < K and kw < K:
                        wr = w_re_f[:, :, kh, kw].T            # (Cout, Cin)
                        wi = w_im_f[:, :, kh, kw].T
                    else:                                      # unused tap
                        wr, wi = zer, zer
                    cols_re.append(jnp.concatenate([wr, -wi], axis=1))
                    cols_im.append(jnp.concatenate([wi, wr], axis=1))
            rows_re.append(jnp.concatenate(cols_re, axis=1))   # (Cout, red)
            rows_im.append(jnp.concatenate(cols_im, axis=1))
    w_all = jnp.stack([jnp.concatenate(rows_re, axis=0),
                       jnp.concatenate(rows_im, axis=0)]).astype(jnp.bfloat16)

    # Per-phase validity mask over the (rmax, cmax) phase grid, lane-padded.
    mask_np = np.zeros((ss, rmax, cmax), np.float32)
    for ph in range(s):
        for pw in range(s):
            rh = -(-(Ho - ph) // s)
            rw = -(-(Wo - pw) // s)
            mask_np[ph * s + pw, :rh, :rw] = 1.0
    mask_np = np.pad(mask_np.reshape(ss, lp_nat), ((0, 0), (0, lp - lp_nat)))
    mask = jnp.asarray(mask_np)

    # Merged affine params: gb[part, 0] = gamma, gb[part, 1] = beta.
    gb = jnp.stack([jnp.stack([gamma_re, beta_re]),
                    jnp.stack([gamma_im, beta_im])]).reshape(2, 2, Cout, 1)
    gb = gb.astype(jnp.float32)

    kernel = functools.partial(
        _decoder_kernel, ss=ss, cout=Cout, lp=lp, b_tile=b_tile,
        inv_count=1.0 / float(Ho * Wo))

    out = pl.pallas_call(
        kernel,
        out_shape=jax.ShapeDtypeStruct((n_pad, 2, ss * Cout, lp), jnp.float32),
        grid=(n_steps, 2),
        in_specs=[
            pl.BlockSpec((1, red, b_tile * lp), lambda n, p: (n, 0, 0)),
            pl.BlockSpec((1, ss * Cout, red), lambda n, p: (p, 0, 0)),
            pl.BlockSpec((ss, lp), lambda n, p: (0, 0)),
            pl.BlockSpec((1, 2, Cout, 1), lambda n, p: (p, 0, 0, 0)),
        ],
        out_specs=pl.BlockSpec((b_tile, 1, ss * Cout, lp),
                               lambda n, p: (n, p, 0, 0)),
        compiler_params=pltpu.CompilerParams(
            dimension_semantics=("parallel", "parallel"),
            vmem_limit_bytes=32 * 1024 * 1024,
        ),
    )(x_taps, w_all, mask, gb)

    # ---- un-interleave sub-pixel phases back to (N, Cout, Ho, Wo, 2) ----
    out = out[:N, :, :, :lp_nat].reshape(N, 2, s, s, Cout, rmax, cmax)
    out = jnp.transpose(out, (0, 1, 4, 5, 2, 6, 3))   # (n, part, co, r, ph, c, pw)
    out = out.reshape(N, 2, Cout, rmax * s, cmax * s)[:, :, :, :Ho, :Wo]
    return jnp.transpose(out, (0, 2, 3, 4, 1))        # (N, Cout, Ho, Wo, 2)


def decoder_reference(x, w_re, w_im, gamma_re, beta_re, gamma_im, beta_im, *, stride):
    """Pure-JAX/XLA reference (lax.conv_general_dilated) for validation."""
    _, _, K, _ = w_re.shape
    s = int(stride)

    def tconv(z_nchw, w):  # ConvTranspose2d(pad=0, out_pad=0, dil=1, no bias)
        w_oihw = jnp.transpose(w, (1, 0, 2, 3))[:, :, ::-1, ::-1]
        return jax.lax.conv_general_dilated(
            z_nchw, w_oihw, window_strides=(1, 1),
            padding=[(K - 1, K - 1), (K - 1, K - 1)],
            lhs_dilation=(s, s), rhs_dilation=(1, 1),
            dimension_numbers=('NCHW', 'OIHW', 'NCHW'))

    xr, xi = x[..., 0], x[..., 1]
    real = tconv(xr, w_re) - tconv(xi, w_im)
    imag = tconv(xi, w_re) + tconv(xr, w_im)

    def inorm(z, g, b):
        mean = z.mean(axis=(2, 3), keepdims=True)
        var = ((z - mean) ** 2).mean(axis=(2, 3), keepdims=True)
        zn = (z - mean) * jax.lax.rsqrt(var + EPS)
        return zn * g.reshape(1, -1, 1, 1) + b.reshape(1, -1, 1, 1)

    real = inorm(real, gamma_re, beta_re)
    imag = inorm(imag, gamma_im, beta_im)
    out = jnp.stack((real, imag), axis=-1)
    return jnp.where(out >= 0, out, NEG_SLOPE * out)


if __name__ == "__main__":
    # Decoder(in_channels=4, out_channels=4, kernel_size=3, stride=2).
    N, Cin, Cout, H, W, K, S = 2, 4, 4, 8, 8, 3, 2

    key = jax.random.PRNGKey(0)
    kx, kwr, kwi, kgr, kbr, kgi, kbi = jax.random.split(key, 7)

    x = jax.random.normal(kx, (N, Cin, H, W, 2), dtype=jnp.float32)
    bound = 1.0 / jnp.sqrt(float(Cin * K * K))
    w_re = jax.random.uniform(kwr, (Cin, Cout, K, K), jnp.float32, -bound, bound)
    w_im = jax.random.uniform(kwi, (Cin, Cout, K, K), jnp.float32, -bound, bound)
    # InstanceNorm affine params (PyTorch default ones/zeros; use non-trivial
    # deterministic values to exercise the affine path).
    gamma_re = 1.0 + 0.1 * jax.random.normal(kgr, (Cout,), jnp.float32)
    beta_re = 0.1 * jax.random.normal(kbr, (Cout,), jnp.float32)
    gamma_im = 1.0 + 0.1 * jax.random.normal(kgi, (Cout,), jnp.float32)
    beta_im = 0.1 * jax.random.normal(kbi, (Cout,), jnp.float32)

    out = decoder_forward(x, w_re, w_im, gamma_re, beta_re, gamma_im, beta_im, stride=S)
    out = jax.block_until_ready(out)

    Ho = (H - 1) * S + K
    assert out.shape == (N, Cout, Ho, Ho, 2), out.shape

    # Strict check: same computation with inputs/weights pre-rounded to bf16
    # (the kernel's MXU operand precision) — isolates structural correctness.
    def _rb(a):
        return a.astype(jnp.bfloat16).astype(jnp.float32)

    ref_strict = decoder_reference(_rb(x), _rb(w_re), _rb(w_im),
                                   gamma_re, beta_re, gamma_im, beta_im, stride=S)
    ref_strict = jax.block_until_ready(ref_strict)
    err_strict = float(jnp.max(jnp.abs(out - ref_strict)))
    assert err_strict < 2e-3, f"mismatch vs bf16-matched reference: {err_strict}"

    # Loose check vs the full-f32 reference (headroom for bf16 MXU rounding).
    ref_f32 = decoder_reference(x, w_re, w_im, gamma_re, beta_re, gamma_im, beta_im,
                                stride=S)
    ref_f32 = jax.block_until_ready(ref_f32)
    err_f32 = float(jnp.max(jnp.abs(out - ref_f32)))
    assert err_f32 < 1e-1, f"mismatch vs f32 reference: {err_f32}"

    # TODO(synk): InstanceNorm2d running_mean/running_var tracking (training-side
    # state update) has no effect on this forward output and is not materialized.
    print("KERNEL_OK")
</pallas_src>

<mosaic_0001>
module attributes {stable_mosaic.version = 11 : i64} {
  func.func @_decoder_kernel(%arg0: i32, %arg1: i32, %arg2: memref<1x32x256xbf16, #tpu.memory_space<vmem>>, %arg3: memref<1x16x32xbf16, #tpu.memory_space<vmem>>, %arg4: memref<4x128xf32, #tpu.memory_space<vmem>>, %arg5: memref<1x2x4x1xf32, #tpu.memory_space<vmem>>, %arg6: memref<2x1x16x128xf32, #tpu.memory_space<vmem>>) attributes {dimension_semantics = [#tpu.dimension_semantics<parallel>, #tpu.dimension_semantics<parallel>], iteration_bounds = array<i64: 1, 2>, scalar_prefetch = 0 : i64, scratch_operands = 0 : i64, tpu.core_type = #tpu.core_type<tc>, window_params = [{transform_indices = @transform_0, window_bounds = array<i64: 1, 32, 256>}, {transform_indices = @transform_1, window_bounds = array<i64: 1, 16, 32>}, {pipeline_mode = #tpu.pipeline_mode<synchronous>, transform_indices = @transform_2, window_bounds = array<i64: 4, 128>}, {transform_indices = @transform_3, window_bounds = array<i64: 1, 2, 4, 1>}, {transform_indices = @transform_4, window_bounds = array<i64: 2, 1, 16, 128>}]} {
    %c0 = arith.constant 0 : index
    %c0_0 = arith.constant 0 : index
    %c0_1 = arith.constant 0 : index
    %0 = vector.load %arg3[%c0, %c0_0, %c0_1] : memref<1x16x32xbf16, #tpu.memory_space<vmem>>, vector<1x16x32xbf16>
    %1 = vector.shape_cast %0 : vector<1x16x32xbf16> to vector<16x32xbf16>
    %c0_2 = arith.constant 0 : index
    %c0_3 = arith.constant 0 : index
    %c0_4 = arith.constant 0 : index
    %2 = vector.load %arg2[%c0_2, %c0_3, %c0_4] : memref<1x32x256xbf16, #tpu.memory_space<vmem>>, vector<1x32x256xbf16>
    %3 = vector.shape_cast %2 : vector<1x32x256xbf16> to vector<32x256xbf16>
    %cst = arith.constant dense<0.000000e+00> : vector<16x256xf32>
    %4 = tpu.matmul %1, %3, %cst {dimension_numbers = #tpu.dot_dimension_numbers<[1], [0], [0], [1], [0, 0, 1, 1], [], []>} : vector<16x32xbf16>, vector<32x256xbf16>, vector<16x256xf32> -> vector<16x256xf32>
    %c0_5 = arith.constant 0 : index
    %c0_6 = arith.constant 0 : index
    %5 = vector.load %arg4[%c0_5, %c0_6] : memref<4x128xf32, #tpu.memory_space<vmem>>, vector<4x128xf32>
    %c0_7 = arith.constant 0 : index
    %c0_8 = arith.constant 0 : index
    %c0_9 = arith.constant 0 : index
    %c0_10 = arith.constant 0 : index
    %6 = vector.load %arg5[%c0_7, %c0_8, %c0_9, %c0_10] : memref<1x2x4x1xf32, #tpu.memory_space<vmem>>, vector<1x1x4x1xf32>
    %7 = vector.shape_cast %6 : vector<1x1x4x1xf32> to vector<4x1xf32>
    %c0_11 = arith.constant 0 : index
    %c1 = arith.constant 1 : index
    %c0_12 = arith.constant 0 : index
    %c0_13 = arith.constant 0 : index
    %8 = vector.load %arg5[%c0_11, %c1, %c0_12, %c0_13] : memref<1x2x4x1xf32, #tpu.memory_space<vmem>>, vector<1x1x4x1xf32>
    %9 = vector.shape_cast %8 : vector<1x1x4x1xf32> to vector<4x1xf32>
    %10 = vector.extract_strided_slice %4 {offsets = [0, 0], sizes = [16, 128], strides = [1, 1]} : vector<16x256xf32> to vector<16x128xf32>
    %cst_14 = arith.constant 0.000000e+00 : f32
    %11 = vector.broadcast %cst_14 : f32 to vector<4x1xf32>
    %cst_15 = arith.constant 0.000000e+00 : f32
    %12 = vector.broadcast %cst_15 : f32 to vector<4x1xf32>
    %13 = vector.extract_strided_slice %10 {offsets = [0, 0], sizes = [4, 128], strides = [1, 1]} : vector<16x128xf32> to vector<4x128xf32>
    %14 = vector.extract_strided_slice %5 {offsets = [0, 0], sizes = [1, 128], strides = [1, 1]} : vector<4x128xf32> to vector<1x128xf32>
    %15 = vector.broadcast %14 : vector<1x128xf32> to vector<4x128xf32>
    %16 = arith.mulf %13, %15 : vector<4x128xf32>
    %cst_16 = arith.constant dense<0.000000e+00> : vector<4xf32>
    %17 = vector.multi_reduction <add>, %16, %cst_16 [1] : vector<4x128xf32> to vector<4xf32>
    %18 = vector.shape_cast %17 : vector<4xf32> to vector<4x1xf32>
    %19 = arith.addf %11, %18 : vector<4x1xf32>
    %20 = arith.mulf %16, %13 : vector<4x128xf32>
    %cst_17 = arith.constant dense<0.000000e+00> : vector<4xf32>
    %21 = vector.multi_reduction <add>, %20, %cst_17 [1] : vector<4x128xf32> to vector<4xf32>
    %22 = vector.shape_cast %21 : vector<4xf32> to vector<4x1xf32>
    %23 = arith.addf %12, %22 : vector<4x1xf32>
    %24 = vector.extract_strided_slice %10 {offsets = [4, 0], sizes = [4, 128], strides = [1, 1]} : vector<16x128xf32> to vector<4x128xf32>
    %25 = vector.extract_strided_slice %5 {offsets = [1, 0], sizes = [1, 128], strides = [1, 1]} : vector<4x128xf32> to vector<1x128xf32>
    %26 = vector.broadcast %25 : vector<1x128xf32> to vector<4x128xf32>
    %27 = arith.mulf %24, %26 : vector<4x128xf32>
    %cst_18 = arith.constant dense<0.000000e+00> : vector<4xf32>
    %28 = vector.multi_reduction <add>, %27, %cst_18 [1] : vector<4x128xf32> to vector<4xf32>
    %29 = vector.shape_cast %28 : vector<4xf32> to vector<4x1xf32>
    %30 = arith.addf %19, %29 : vector<4x1xf32>
    %31 = arith.mulf %27, %24 : vector<4x128xf32>
    %cst_19 = arith.constant dense<0.000000e+00> : vector<4xf32>
    %32 = vector.multi_reduction <add>, %31, %cst_19 [1] : vector<4x128xf32> to vector<4xf32>
    %33 = vector.shape_cast %32 : vector<4xf32> to vector<4x1xf32>
    %34 = arith.addf %23, %33 : vector<4x1xf32>
    %35 = vector.extract_strided_slice %10 {offsets = [8, 0], sizes = [4, 128], strides = [1, 1]} : vector<16x128xf32> to vector<4x128xf32>
    %36 = vector.extract_strided_slice %5 {offsets = [2, 0], sizes = [1, 128], strides = [1, 1]} : vector<4x128xf32> to vector<1x128xf32>
    %37 = vector.broadcast %36 : vector<1x128xf32> to vector<4x128xf32>
    %38 = arith.mulf %35, %37 : vector<4x128xf32>
    %cst_20 = arith.constant dense<0.000000e+00> : vector<4xf32>
    %39 = vector.multi_reduction <add>, %38, %cst_20 [1] : vector<4x128xf32> to vector<4xf32>
    %40 = vector.shape_cast %39 : vector<4xf32> to vector<4x1xf32>
    %41 = arith.addf %30, %40 : vector<4x1xf32>
    %42 = arith.mulf %38, %35 : vector<4x128xf32>
    %cst_21 = arith.constant dense<0.000000e+00> : vector<4xf32>
    %43 = vector.multi_reduction <add>, %42, %cst_21 [1] : vector<4x128xf32> to vector<4xf32>
    %44 = vector.shape_cast %43 : vector<4xf32> to vector<4x1xf32>
    %45 = arith.addf %34, %44 : vector<4x1xf32>
    %46 = vector.extract_strided_slice %10 {offsets = [12, 0], sizes = [4, 128], strides = [1, 1]} : vector<16x128xf32> to vector<4x128xf32>
    %47 = vector.extract_strided_slice %5 {offsets = [3, 0], sizes = [1, 128], strides = [1, 1]} : vector<4x128xf32> to vector<1x128xf32>
    %48 = vector.broadcast %47 : vector<1x128xf32> to vector<4x128xf32>
    %49 = arith.mulf %46, %48 : vector<4x128xf32>
    %cst_22 = arith.constant dense<0.000000e+00> : vector<4xf32>
    %50 = vector.multi_reduction <add>, %49, %cst_22 [1] : vector<4x128xf32> to vector<4xf32>
    %51 = vector.shape_cast %50 : vector<4xf32> to vector<4x1xf32>
    %52 = arith.addf %41, %51 : vector<4x1xf32>
    %53 = arith.mulf %49, %46 : vector<4x128xf32>
    %cst_23 = arith.constant dense<0.000000e+00> : vector<4xf32>
    %54 = vector.multi_reduction <add>, %53, %cst_23 [1] : vector<4x128xf32> to vector<4xf32>
    %55 = vector.shape_cast %54 : vector<4xf32> to vector<4x1xf32>
    %56 = arith.addf %45, %55 : vector<4x1xf32>
    %cst_24 = arith.constant 0.00346020772 : f32
    %57 = vector.broadcast %cst_24 : f32 to vector<4x1xf32>
    %58 = arith.mulf %52, %57 : vector<4x1xf32>
    %cst_25 = arith.constant 0.00346020772 : f32
    %59 = vector.broadcast %cst_25 : f32 to vector<4x1xf32>
    %60 = arith.mulf %56, %59 : vector<4x1xf32>
    %61 = arith.mulf %58, %58 : vector<4x1xf32>
    %62 = arith.subf %60, %61 : vector<4x1xf32>
    %cst_26 = arith.constant 9.99999974E-6 : f32
    %63 = vector.broadcast %cst_26 : f32 to vector<4x1xf32>
    %64 = arith.addf %62, %63 : vector<4x1xf32>
    %65 = math.rsqrt %64 : vector<4x1xf32>
    %66 = arith.mulf %65, %7 : vector<4x1xf32>
    %67 = arith.mulf %58, %66 : vector<4x1xf32>
    %68 = arith.subf %9, %67 : vector<4x1xf32>
    %69 = tpu.concatenate %66, %66, %66, %66 in 0 : vector<4x1xf32>, vector<4x1xf32>, vector<4x1xf32>, vector<4x1xf32> -> vector<16x1xf32>
    %70 = tpu.concatenate %68, %68, %68, %68 in 0 : vector<4x1xf32>, vector<4x1xf32>, vector<4x1xf32>, vector<4x1xf32> -> vector<16x1xf32>
    %71 = vector.broadcast %69 : vector<16x1xf32> to vector<16x128xf32>
    %72 = arith.mulf %10, %71 : vector<16x128xf32>
    %73 = vector.broadcast %70 : vector<16x1xf32> to vector<16x128xf32>
    %74 = arith.addf %72, %73 : vector<16x128xf32>
    %cst_27 = arith.constant 0.000000e+00 : f32
    %75 = vector.broadcast %cst_27 : f32 to vector<16x128xf32>
    %76 = arith.cmpf oge, %74, %75 : vector<16x128xf32>
    %cst_28 = arith.constant 0.00999999977 : f32
    %77 = vector.broadcast %cst_28 : f32 to vector<16x128xf32>
    %78 = arith.mulf %77, %74 : vector<16x128xf32>
    %79 = arith.select %76, %74, %78 : vector<16x128xi1>, vector<16x128xf32>
    %c0_29 = arith.constant 0 : index
    %c0_30 = arith.constant 0 : index
    %c0_31 = arith.constant 0 : index
    %c0_32 = arith.constant 0 : index
    %80 = vector.load %arg6[%c0_29, %c0_30, %c0_31, %c0_32] : memref<2x1x16x128xf32, #tpu.memory_space<vmem>>, vector<1x1x16x128xf32>
    %81 = vector.shape_cast %80 : vector<1x1x16x128xf32> to vector<16x128xf32>
    %82 = vector.shape_cast %79 : vector<16x128xf32> to vector<1x1x16x128xf32>
    tpu.vector_store %arg6[%c0_29, %c0_30, %c0_31, %c0_32], %82 {strides = array<i32>} : memref<2x1x16x128xf32, #tpu.memory_space<vmem>>, vector<1x1x16x128xf32>,
    %83 = vector.extract_strided_slice %4 {offsets = [0, 128], sizes = [16, 128], strides = [1, 1]} : vector<16x256xf32> to vector<16x128xf32>
    %cst_33 = arith.constant 0.000000e+00 : f32
    %84 = vector.broadcast %cst_33 : f32 to vector<4x1xf32>
    %cst_34 = arith.constant 0.000000e+00 : f32
    %85 = vector.broadcast %cst_34 : f32 to vector<4x1xf32>
    %86 = vector.extract_strided_slice %83 {offsets = [0, 0], sizes = [4, 128], strides = [1, 1]} : vector<16x128xf32> to vector<4x128xf32>
    %87 = vector.extract_strided_slice %5 {offsets = [0, 0], sizes = [1, 128], strides = [1, 1]} : vector<4x128xf32> to vector<1x128xf32>
    %88 = vector.broadcast %87 : vector<1x128xf32> to vector<4x128xf32>
    %89 = arith.mulf %86, %88 : vector<4x128xf32>
    %cst_35 = arith.constant dense<0.000000e+00> : vector<4xf32>
    %90 = vector.multi_reduction <add>, %89, %cst_35 [1] : vector<4x128xf32> to vector<4xf32>
    %91 = vector.shape_cast %90 : vector<4xf32> to vector<4x1xf32>
    %92 = arith.addf %84, %91 : vector<4x1xf32>
    %93 = arith.mulf %89, %86 : vector<4x128xf32>
    %cst_36 = arith.constant dense<0.000000e+00> : vector<4xf32>
    %94 = vector.multi_reduction <add>, %93, %cst_36 [1] : vector<4x128xf32> to vector<4xf32>
    %95 = vector.shape_cast %94 : vector<4xf32> to vector<4x1xf32>
    %96 = arith.addf %85, %95 : vector<4x1xf32>
    %97 = vector.extract_strided_slice %83 {offsets = [4, 0], sizes = [4, 128], strides = [1, 1]} : vector<16x128xf32> to vector<4x128xf32>
    %98 = vector.extract_strided_slice %5 {offsets = [1, 0], sizes = [1, 128], strides = [1, 1]} : vector<4x128xf32> to vector<1x128xf32>
    %99 = vector.broadcast %98 : vector<1x128xf32> to vector<4x128xf32>
    %100 = arith.mulf %97, %99 : vector<4x128xf32>
    %cst_37 = arith.constant dense<0.000000e+00> : vector<4xf32>
    %101 = vector.multi_reduction <add>, %100, %cst_37 [1] : vector<4x128xf32> to vector<4xf32>
    %102 = vector.shape_cast %101 : vector<4xf32> to vector<4x1xf32>
    %103 = arith.addf %92, %102 : vector<4x1xf32>
    %104 = arith.mulf %100, %97 : vector<4x128xf32>
    %cst_38 = arith.constant dense<0.000000e+00> : vector<4xf32>
    %105 = vector.multi_reduction <add>, %104, %cst_38 [1] : vector<4x128xf32> to vector<4xf32>
    %106 = vector.shape_cast %105 : vector<4xf32> to vector<4x1xf32>
    %107 = arith.addf %96, %106 : vector<4x1xf32>
    %108 = vector.extract_strided_slice %83 {offsets = [8, 0], sizes = [4, 128], strides = [1, 1]} : vector<16x128xf32> to vector<4x128xf32>
    %109 = vector.extract_strided_slice %5 {offsets = [2, 0], sizes = [1, 128], strides = [1, 1]} : vector<4x128xf32> to vector<1x128xf32>
    %110 = vector.broadcast %109 : vector<1x128xf32> to vector<4x128xf32>
    %111 = arith.mulf %108, %110 : vector<4x128xf32>
    %cst_39 = arith.constant dense<0.000000e+00> : vector<4xf32>
    %112 = vector.multi_reduction <add>, %111, %cst_39 [1] : vector<4x128xf32> to vector<4xf32>
    %113 = vector.shape_cast %112 : vector<4xf32> to vector<4x1xf32>
    %114 = arith.addf %103, %113 : vector<4x1xf32>
    %115 = arith.mulf %111, %108 : vector<4x128xf32>
    %cst_40 = arith.constant dense<0.000000e+00> : vector<4xf32>
    %116 = vector.multi_reduction <add>, %115, %cst_40 [1] : vector<4x128xf32> to vector<4xf32>
    %117 = vector.shape_cast %116 : vector<4xf32> to vector<4x1xf32>
    %118 = arith.addf %107, %117 : vector<4x1xf32>
    %119 = vector.extract_strided_slice %83 {offsets = [12, 0], sizes = [4, 128], strides = [1, 1]} : vector<16x128xf32> to vector<4x128xf32>
    %120 = vector.extract_strided_slice %5 {offsets = [3, 0], sizes = [1, 128], strides = [1, 1]} : vector<4x128xf32> to vector<1x128xf32>
    %121 = vector.broadcast %120 : vector<1x128xf32> to vector<4x128xf32>
    %122 = arith.mulf %119, %121 : vector<4x128xf32>
    %cst_41 = arith.constant dense<0.000000e+00> : vector<4xf32>
    %123 = vector.multi_reduction <add>, %122, %cst_41 [1] : vector<4x128xf32> to vector<4xf32>
    %124 = vector.shape_cast %123 : vector<4xf32> to vector<4x1xf32>
    %125 = arith.addf %114, %124 : vector<4x1xf32>
    %126 = arith.mulf %122, %119 : vector<4x128xf32>
    %cst_42 = arith.constant dense<0.000000e+00> : vector<4xf32>
    %127 = vector.multi_reduction <add>, %126, %cst_42 [1] : vector<4x128xf32> to vector<4xf32>
    %128 = vector.shape_cast %127 : vector<4xf32> to vector<4x1xf32>
    %129 = arith.addf %118, %128 : vector<4x1xf32>
    %cst_43 = arith.constant 0.00346020772 : f32
    %130 = vector.broadcast %cst_43 : f32 to vector<4x1xf32>
    %131 = arith.mulf %125, %130 : vector<4x1xf32>
    %cst_44 = arith.constant 0.00346020772 : f32
    %132 = vector.broadcast %cst_44 : f32 to vector<4x1xf32>
    %133 = arith.mulf %129, %132 : vector<4x1xf32>
    %134 = arith.mulf %131, %131 : vector<4x1xf32>
    %135 = arith.subf %133, %134 : vector<4x1xf32>
    %cst_45 = arith.constant 9.99999974E-6 : f32
    %136 = vector.broadcast %cst_45 : f32 to vector<4x1xf32>
    %137 = arith.addf %135, %136 : vector<4x1xf32>
    %138 = math.rsqrt %137 : vector<4x1xf32>
    %139 = arith.mulf %138, %7 : vector<4x1xf32>
    %140 = arith.mulf %131, %139 : vector<4x1xf32>
    %141 = arith.subf %9, %140 : vector<4x1xf32>
    %142 = tpu.concatenate %139, %139, %139, %139 in 0 : vector<4x1xf32>, vector<4x1xf32>, vector<4x1xf32>, vector<4x1xf32> -> vector<16x1xf32>
    %143 = tpu.concatenate %141, %141, %141, %141 in 0 : vector<4x1xf32>, vector<4x1xf32>, vector<4x1xf32>, vector<4x1xf32> -> vector<16x1xf32>
    %144 = vector.broadcast %142 : vector<16x1xf32> to vector<16x128xf32>
    %145 = arith.mulf %83, %144 : vector<16x128xf32>
    %146 = vector.broadcast %143 : vector<16x1xf32> to vector<16x128xf32>
    %147 = arith.addf %145, %146 : vector<16x128xf32>
    %cst_46 = arith.constant 0.000000e+00 : f32
    %148 = vector.broadcast %cst_46 : f32 to vector<16x128xf32>
    %149 = arith.cmpf oge, %147, %148 : vector<16x128xf32>
    %cst_47 = arith.constant 0.00999999977 : f32
    %150 = vector.broadcast %cst_47 : f32 to vector<16x128xf32>
    %151 = arith.mulf %150, %147 : vector<16x128xf32>
    %152 = arith.select %149, %147, %151 : vector<16x128xi1>, vector<16x128xf32>
    %c1_48 = arith.constant 1 : index
    %c0_49 = arith.constant 0 : index
    %c0_50 = arith.constant 0 : index
    %c0_51 = arith.constant 0 : index
    %153 = vector.load %arg6[%c1_48, %c0_49, %c0_50, %c0_51] : memref<2x1x16x128xf32, #tpu.memory_space<vmem>>, vector<1x1x16x128xf32>
    %154 = vector.shape_cast %153 : vector<1x1x16x128xf32> to vector<16x128xf32>
    %155 = vector.shape_cast %152 : vector<16x128xf32> to vector<1x1x16x128xf32>
    tpu.vector_store %arg6[%c1_48, %c0_49, %c0_50, %c0_51], %155 {strides = array<i32>} : memref<2x1x16x128xf32, #tpu.memory_space<vmem>>, vector<1x1x16x128xf32>,
    return
  }
  func.func @transform_0(%arg0: i32, %arg1: i32) -> (i32, i32, i32) {
    %c0_i32 = arith.constant 0 : i32
    %c0_i32_0 = arith.constant 0 : i32
    %c0_i32_1 = arith.constant 0 : i32
    return %arg0, %c0_i32, %c0_i32_0 : i32, i32, i32
  }
  func.func @transform_1(%arg0: i32, %arg1: i32) -> (i32, i32, i32) {
    %c0_i32 = arith.constant 0 : i32
    %c0_i32_0 = arith.constant 0 : i32
    %c0_i32_1 = arith.constant 0 : i32
    return %arg1, %c0_i32, %c0_i32_0 : i32, i32, i32
  }
  func.func @transform_2(%arg0: i32, %arg1: i32) -> (i32, i32) {
    %c0_i32 = arith.constant 0 : i32
    %c0_i32_0 = arith.constant 0 : i32
    %c0_i32_1 = arith.constant 0 : i32
    return %c0_i32, %c0_i32_0 : i32, i32
  }
  func.func @transform_3(%arg0: i32, %arg1: i32) -> (i32, i32, i32, i32) {
    %c0_i32 = arith.constant 0 : i32
    %c0_i32_0 = arith.constant 0 : i32
    %c0_i32_1 = arith.constant 0 : i32
    %c0_i32_2 = arith.constant 0 : i32
    return %arg1, %c0_i32, %c0_i32_0, %c0_i32_1 : i32, i32, i32, i32
  }
  func.func @transform_4(%arg0: i32, %arg1: i32) -> (i32, i32, i32, i32) {
    %c0_i32 = arith.constant 0 : i32
    %c0_i32_0 = arith.constant 0 : i32
    %c0_i32_1 = arith.constant 0 : i32
    return %arg0, %arg1, %c0_i32, %c0_i32_0 : i32, i32, i32, i32
  }
}

</mosaic_0001>

<bundles_post_ra>
// kernel: tpu_custom_call.1
= control target key start
LH: loop header
LB: loop body
LE: loop exit
PB: predicated region body
PF: predicated region fallthrough
CT: control target
= control target key end

     0   :  { %9 = vsyncpa [#allocation3], 0  ;;  %s1106_s0 = inlined_call_operand.hbm [shape: bf16[1,32,256], index: 0, kind: input, shape index: {}]   ;;  %s1107_s1 = inlined_call_operand.vmem [shape: bf16[2,16,32], index: 1, kind: input, shape index: {}]   ;;  %s1108_s2 = inlined_call_operand.vmem [shape: f32[4,128], index: 2, kind: input, shape index: {}]   ;;  %s1109_s3 = inlined_call_operand.vmem [shape: f32[2,2,4,1], index: 3, kind: input, shape index: {}]   ;;  %s1110_s4 = inlined_call_operand.hbm [shape: f32[2,2,16,128], index: 4, kind: output, shape index: {}]  }
   0x1   :  { %10 = vsyncpa [#allocation4], 0 }
   0x2   :  { %12 = vsyncpa [#allocation4 + $0x1], 0  ;;  %s919_s15 = smov 0   ;;  %s921_s16 = smov 0  }
   0x3   :  { %s923_s17 = smov 0   ;;  %s925_s18 = smov 0  }
   0x4   :  { %s927_s19 = smov 0   ;;  %s929_s20 = smov 0  }
   0x5 LB: > { %s677_s21 = sadd.s32 4294967295, %s881_s20   ;;  %s678_s22 = sadd.s32 4294967294, %s881_s20   ;;  %s881_s20 = sphi %s929_s20, %s18_s20   ;;  %s877_s19 = sphi %s927_s19, %s1119_s19   ;;  %s873_s18 = sphi %s925_s18, %s1118_s18   ;;  %s869_s17 = sphi %s923_s17, %s1117_s17   ;;  %s865_s16 = sphi %s921_s16, %s1116_s16   ;;  %s861_s15 = sphi %s919_s15, %s1115_s15  }
   0x6   : > { %s27_s23 = sadd.s32 1, %s877_s19  ;;  %s138_s24 = sadd.s32 1, %s869_s17 }
   0x7   : > { %p28_p0 = scmp.ge.s32.totalorder %s27_s23, 2  ;;  %p148_p1 = scmp.ne.s32.totalorder %s869_s17, %s865_s16 }
   0x8   : > { %p149_p2 = scmp.eq.s32.totalorder %s677_s21, 1  ;;  %p154_p3 = scmp.ne.s32.totalorder %s865_s16, %s861_s15 }
   0x9   : > { %s1121_s23 = smov (%p28_p0, %s27_s23), 0  ;;  %p155_p5 = scmp.eq.s32.totalorder %s678_s22, 1 }
   0xa   : > { %p959_p4 = por %p149_p2, %p148_p1  ;;  %s134_s26 = ssub.s32 %s877_s19, %s1121_s23 }
   0xb   : > { %p679_p6 = scmp.ge.s32.totalorder %s881_s20, 1  ;;  %p136_p7 = scmp.eq.s32.totalorder %s134_s26, 0 }
   0xc   : > { %p966_p8 = por %p155_p5, %p154_p3  ;;  %p162_p9 = scmp.lt.s32.totalorder %s881_s20, 3 }
   0xd   : > { %s972_s28 = scalar_select %p136_p7, %s869_s17, %s138_s24  }
   0xe   : > { %p974_p10 = pnand %p679_p6, %p162_p9  ;;  %p978_p11 = scmp.eq.s32.totalorder %s677_s21, 0 }
   0xf   : > { %s883_s5 = smov [#allocation2]  }
  0x10   : > { %p718_p12 = pneg %p974_p10  ;;  %s177_s6 = sshll.u32 %s883_s5, 4  ;;  %s178_s6 = int_to_ptr.vmem [resolvable:$true] %s177_s6 }
  0x11   : > { %s812_s7 = scalar_lea.vmem %s178_s6, 512  ;;  %p820_p5 = scmp.lt.s32.totalorder %s178_s6, %s178_s6 }
  0x12   : > { %p719_p13 = pnand %p978_p11, %p718_p12  ;;  %p813_p1 = scmp.ne.s32.totalorder %s178_s6, %s812_s7 }
  0x13   : > { %p821_p6 = scmp.lt.s32.totalorder %s812_s7, %s812_s7 }
  0x14   : > { %p803_p0 = pneg %p719_p13 }
  0x15   : > { %p822_p7 = por %p821_p6, %p820_p5 }
  0x16   : > { %p815_p2 = pnand %p813_p1, %p803_p0 }
  0x18   : > { %p816_p3 = pneg %p815_p2 }
  0x1a   : > { %p823_p9 = pnand %p822_p7, %p816_p3 }
  0x1c   : > { %826 = shalt.err (!%p823_p9)
}
  0x1d   : > { %s884_s8 = smov 128   ;;  %s885_s9 = smov 8  }
  0x1e   : > { %721 = dma.hbm_to_vmem [thread:$0]  (!%p719_p13), %s1106_s0, 512, %s178_s6, [#allocation3], %s884_s8, %s884_s8, %s885_s9  }
  0x1f   : > { %212 = sbr.rel (%p974_p10) target bundleno = 585 (0x249), region = 36 }
  0x24   : > { %852 = dma.done.wait (%p978_p11), [#allocation3], 512  }
  0x25   : > { %854 = vsyncadd (%p978_p11), [#allocation3], 4294966784  ;;  %p243_p12 = scmp.lt.s32.totalorder %s873_s18, 1  ;;  %v886_v0 = vmov 0   ;;  %v790_v1 = vld [vmem:[#allocation2 + $0x14] ss:$8 sps:$4 sm:$0xff]   ;;  %v337_v6 = vlaneseq }
  0x26   : > { %322 = vmatprep.mubr.bf16.mxu0 %v886_v0  ;;  %788 = vset.pattern.permute.xlu0 %v886_v0  ;;  %v792_v2 = vld [vmem:[#allocation2 + $0x10] ss:$8 sps:$4 sm:$0xff]   ;;  %v793_v3 = vld [vmem:[#allocation2 + $0x4] ss:$8 sps:$4 sm:$0xff]   ;;  %v795_v4 = vld [vmem:[#allocation2] ss:$8 sps:$4 sm:$0xff]  }
  0x27   : > { %s997_s12 = scalar_select %p243_p12, %s873_s18, 1  ;;  %789 = vset.pattern.permute.xlu1 %v886_v0  ;;  %302 = vmatprep.subr.bf16.mxu0 %v790_v1  ;;  %vm286_vm0 = vcmask 261120   ;;  %v338_v7 = vshrl.u32 %v337_v6, 7  ;;  %v333_v10 = vld [vmem:[%s1108_s2] sm:$0xf]  ;;  %vm357_vm1 = vcmask 1047556  }
  0x28   : > { %303 = vmatpush1.bf16.msra.mxu0 %v792_v2  ;;  %vm342_vm2 = vcmask 1043456   ;;  %s240_s6 = sand.u32 1, %s865_s16  }
  0x29   : > { %s703_s13 = sshll.u32 %s997_s12, 3  ;;  %304 = vmatprep.subr.bf16.mxu0 %v793_v3  ;;  %v354_v8 = vsub.s32 1, %v338_v7  ;;  %v339_v9 = vsub.s32 0, %v338_v7  ;;  %v375_v17 = vsub.s32 2, %v338_v7  ;;  %v389_v23 = vsub.s32 3, %v338_v7  ;;  %s684_s7 = sshll.u32 %s240_s6, 5 }
  0x2a   : > { %s247_s22 = scalar_lea.vmem %s1107_s1, %s703_s13  ;;  %s252_s5 = scalar_lea.vmem %s1109_s3, %s703_s13 }
  0x2b   : > { %v796_v5 = vld [vmem:[%s247_s22] sm:$0xff]   ;;  %v355_v11 = vrot.slane %v333_v10, %v354_v8  ;;  %v340_v12 = vrot.slane %v333_v10, %v339_v9  ;;  %v376_v22 = vrot.slane %v333_v10, %v375_v17  ;;  %v390_v29 = vrot.slane %v333_v10, %v389_v23  ;;  %s242_s8 = scalar_lea.vmem [#allocation5], %s684_s7  ;;  %s539_s9 = scalar_lea.sflag [#allocation4], %s240_s6 }
  0x2c   : > { %305 = vmatpush1.bf16.msra.mxu0 %v795_v4 }
  0x2f   : > { %694 = vmatmul.mubr.msk.bf16.vlgmr.msra.gmra.mxu0 %vm286_vm0, %v796_v5 }
  0xef   : > { %v1008_v13 = vpop.f32.mrf.mxu0 }
  0xf0   : > { %v356_v14 = vmul.f32 %v355_v11, %v1008_v13  ;;  %v341_v15 = vmul.f32 %v340_v12, %v1008_v13 }
  0xf1   : > { %v1012_v16 = vpop.f32.mrf.mxu0 }
  0xf2   : > { %v358_v18 = vsel %vm357_vm1, %v356_v14, 0.0  ;;  %v343_v19 = vsel %vm342_vm2, %v341_v15, 0.0  ;;  %v365_v20 = vmul.f32 %v356_v14, %v1008_v13  ;;  %v456_v21 = vmul.f32 %v355_v11, %v1012_v16 }
  0xf3   : > { %359 = vadd.xlane.f32.xlu0 %v358_v18  ;;  %344 = vadd.xlane.f32.xlu1 %v343_v19  ;;  %v446_v27 = vmul.f32 %v340_v12, %v1012_v16  ;;  %v1022_v28 = vpop.f32.mrf.mxu0  ;;  %v347_v32 = vmul.f32 %v341_v15, %v1008_v13 }
  0xf4   : > { %v366_v24 = vsel %vm357_vm1, %v365_v20, 0.0  ;;  %v457_v25 = vsel %vm357_vm1, %v456_v21, 0.0  ;;  %v464_v26 = vmul.f32 %v456_v21, %v1012_v16  ;;  %v377_v33 = vmul.f32 %v376_v22, %v1022_v28 }
  0xf5   : > { %v447_v31 = vsel %vm342_vm2, %v446_v27, 0.0  ;;  %v348_v34 = vsel %vm342_vm2, %v347_v32, 0.0  ;;  %v391_v36 = vmul.f32 %v390_v29, %v1022_v28  ;;  %v451_v37 = vmul.f32 %v446_v27, %v1012_v16  ;;  %v1032_v38 = vpop.f32.mrf.mxu0 }
  0xf6   : > { %v465_v30 = vsel %vm357_vm1, %v464_v26, 0.0  ;;  %v378_v35 = vsel %vm342_vm2, %v377_v33, 0.0  ;;  %v482_v41 = vmul.f32 %v390_v29, %v1032_v38  ;;  %v472_v42 = vmul.f32 %v376_v22, %v1032_v38 }
  0xf7   : > { %367 = vadd.xlane.f32.xlu1 %v366_v24  ;;  %458 = vadd.xlane.f32.xlu0 %v457_v25  ;;  %v392_v39 = vsel %vm357_vm1, %v391_v36, 0.0  ;;  %v452_v40 = vsel %vm342_vm2, %v451_v37, 0.0  ;;  %v399_v45 = vmul.f32 %v391_v36, %v1022_v28  ;;  %v382_v46 = vmul.f32 %v377_v33, %v1022_v28 }
  0xf8   : > { %v483_v43 = vsel %vm357_vm1, %v482_v41, 0.0  ;;  %v473_v44 = vsel %vm342_vm2, %v472_v42, 0.0  ;;  %v490_v49 = vmul.f32 %v482_v41, %v1032_v38  ;;  %v477_v50 = vmul.f32 %v472_v42, %v1032_v38  ;;  %v695_v42 = vld [vmem:[%s252_s5 + $0x4] sm:$0xf] }
  0xf9   : > { %v400_v47 = vsel %vm357_vm1, %v399_v45, 0.0  ;;  %v383_v48 = vsel %vm342_vm2, %v382_v46, 0.0 }
  0xfa   : > { %v491_v51 = vsel %vm357_vm1, %v490_v49, 0.0  ;;  %v478_v52 = vsel %vm342_vm2, %v477_v50, 0.0 }
  0xfb   : > { %466 = vadd.xlane.f32.xlu1 %v465_v30  ;;  %448 = vadd.xlane.f32.xlu0 %v447_v31 }
  0xff   : > { %349 = vadd.xlane.f32.xlu0 %v348_v34  ;;  %379 = vadd.xlane.f32.xlu1 %v378_v35 }
 0x103   : > { %393 = vadd.xlane.f32.xlu0 %v392_v39  ;;  %453 = vadd.xlane.f32.xlu1 %v452_v40  ;;  %v334_v39 = vld [vmem:[%s252_s5] sm:$0xf] }
 0x107   : > { %484 = vadd.xlane.f32.xlu1 %v483_v43  ;;  %474 = vadd.xlane.f32.xlu0 %v473_v44 }
 0x10b   : > { %401 = vadd.xlane.f32.xlu1 %v400_v47  ;;  %384 = vadd.xlane.f32.xlu0 %v383_v48 }
 0x10f   : > { %492 = vadd.xlane.f32.xlu1 %v491_v51  ;;  %479 = vadd.xlane.f32.xlu0 %v478_v52 }
 0x17c   : > { %v360_v53 = vpop.xlane.xlu0 %359  ;;  %v345_v54 = vpop.xlane.xlu1 %344 }
 0x17d   : > { %v362_v59 = vrot.slane %v360_v53, 4 }
 0x17f   : > { %v364_v62 = vadd.f32 %v362_v59, %v345_v54 }
 0x180   : > { %v368_v55 = vpop.xlane.xlu1 %367  ;;  %v459_v56 = vpop.xlane.xlu0 %458 }
 0x181   : > { %v461_v1 = vrot.slane %v459_v56, 4  ;;  %v370_v8 = vrot.slane %v368_v55, 4 }
 0x184   : > { %v467_v57 = vpop.xlane.xlu1 %466  ;;  %v449_v58 = vpop.xlane.xlu0 %448 }
 0x185   : > { %v463_v4 = vadd.f32 %v461_v1, %v449_v58  ;;  %v469_v17 = vrot.slane %v467_v57, 4 }
 0x188   : > { %v350_v60 = vpop.xlane.xlu0 %349  ;;  %v380_v61 = vpop.xlane.xlu1 %379 }
 0x189   : > { %v381_v3 = vadd.f32 %v380_v61, %v364_v62  ;;  %v372_v11 = vadd.f32 %v370_v8, %v350_v60 }
 0x18c   : > { %v394_v63 = vpop.xlane.xlu0 %393  ;;  %v454_v0 = vpop.xlane.xlu1 %453 }
 0x18d   : > { %v396_v2 = vrot.slane %v394_v63, 4  ;;  %v471_v21 = vadd.f32 %v469_v17, %v454_v0 }
 0x18f   : > { %v398_v5 = vadd.f32 %v396_v2, %v381_v3 }
 0x190   : > { %v485_v6 = vpop.xlane.xlu1 %484  ;;  %v475_v7 = vpop.xlane.xlu0 %474 }
 0x191   : > { %v487_v9 = vrot.slane %v485_v6, 4  ;;  %v476_v10 = vadd.f32 %v475_v7, %v463_v4  ;;  %v407_v12 = vmul.f32 0.0034602077, %v398_v5 }
 0x193   : > { %v489_v18 = vadd.f32 %v487_v9, %v476_v10  ;;  %v409_v23 = vmul.f32 %v407_v12, %v407_v12 }
 0x194   : > { %v402_v14 = vpop.xlane.xlu1 %401  ;;  %v385_v15 = vpop.xlane.xlu0 %384 }
 0x195   : > { %v404_v19 = vrot.slane %v402_v14, 4  ;;  %v386_v20 = vadd.f32 %v385_v15, %v372_v11  ;;  %v498_v26 = vmul.f32 0.0034602077, %v489_v18 }
 0x197   : > { %v406_v22 = vadd.f32 %v404_v19, %v386_v20  ;;  %v500_v33 = vmul.f32 %v498_v26, %v498_v26 }
 0x198   : > { %v493_v24 = vpop.xlane.xlu1 %492  ;;  %v480_v25 = vpop.xlane.xlu0 %479 }
 0x199   : > { %v408_v27 = vmul.f32 0.0034602077, %v406_v22  ;;  %v495_v29 = vrot.slane %v493_v24, 4  ;;  %v481_v30 = vadd.f32 %v480_v25, %v471_v21 }
 0x19b   : > { %v410_v31 = vsub.f32 %v408_v27, %v409_v23  ;;  %v497_v32 = vadd.f32 %v495_v29, %v481_v30 }
 0x19d   : > { %v411_v34 = vadd.f32 1e-05, %v410_v31  ;;  %v499_v35 = vmul.f32 0.0034602077, %v497_v32 }
 0x19f   : > { %797 = vrsqrt.f32 %v411_v34  ;;  %v501_v36 = vsub.f32 %v499_v35, %v500_v33 }
 0x1a1   : > { %v502_v37 = vadd.f32 1e-05, %v501_v36 }
 0x1a3   : > { %799 = vrsqrt.f32 %v502_v37 }
 0x1ac   : > { %v798_v40 = vpop.eup %797 }
 0x1ad   : > { %v413_v41 = vmul.f32 %v798_v40, %v334_v39 }
 0x1af   : > { %v417_v43 = vrot.slane %v413_v41, 4  ;;  %v414_v44 = vmul.f32 %v413_v41, %v407_v12 }
 0x1b0   : > { %v800_v45 = vpop.eup %799 }
 0x1b1   : > { %v419_v46 = vsel %vm342_vm2, %v413_v41, %v417_v43  ;;  %v504_v47 = vmul.f32 %v800_v45, %v334_v39  ;;  %v415_v48 = vsub.f32 %v695_v42, %v414_v44 }
 0x1b2   : > { %426 = vperm.xlu0 %788, %v419_v46  }
 0x1b3   : > { %v508_v49 = vrot.slane %v504_v47, 4  ;;  %v505_v50 = vmul.f32 %v504_v47, %v498_v26  ;;  %v421_v52 = vrot.slane %v415_v48, 4 }
 0x1b5   : > { %v510_v51 = vsel %vm342_vm2, %v504_v47, %v508_v49  ;;  %v506_v53 = vsub.f32 %v695_v42, %v505_v50  ;;  %v423_v54 = vsel %vm342_vm2, %v415_v48, %v421_v52 }
 0x1b6   : > { %517 = vperm.xlu1 %789, %v510_v51  }
 0x1b7   : > { %v512_v55 = vrot.slane %v506_v53, 4 }
 0x1b9   : > { %v514_v56 = vsel %vm342_vm2, %v506_v53, %v512_v55 }
 0x1ba   : > { %433 = vperm.xlu1 %789, %v423_v54  }
 0x1be   : > { %524 = vperm.xlu1 %789, %v514_v56  }
 0x22d   : > { %v427_v57 = vpop.permute.xlu0 %426 }
 0x22e   : > { %v429_v59 = vmul.f32 %v427_v57, %v1008_v13  ;;  %v430_v60 = vmul.f32 %v427_v57, %v1022_v28 }
 0x231   : > { %v518_v58 = vpop.permute.xlu1 %517 }
 0x232   : > { %v520_v0 = vmul.f32 %v518_v58, %v1012_v16  ;;  %v521_v1 = vmul.f32 %v518_v58, %v1032_v38 }
 0x235   : > { %v434_v61 = vpop.permute.xlu1 %433 }
 0x236   : > { %v436_v62 = vadd.f32 %v434_v61, %v429_v59  ;;  %v437_v63 = vadd.f32 %v434_v61, %v430_v60 }
 0x238   : > { %vm438_vm3 = vcmp.ge.f32.partialorder %v436_v62, 0.0  ;;  %vm439_vm4 = vcmp.ge.f32.partialorder %v437_v63, 0.0  ;;  %v440_v2 = vmul.f32 0.01, %v436_v62  ;;  %v441_v3 = vmul.f32 0.01, %v437_v63 }
 0x239   : > { %v525_v4 = vpop.permute.xlu1 %524 }
 0x23a   : > { %v442_v5 = vsel %vm438_vm3, %v436_v62, %v440_v2  ;;  %v443_v6 = vsel %vm439_vm4, %v437_v63, %v441_v3  ;;  %v527_v13 = vadd.f32 %v525_v4, %v520_v0  ;;  %v528_v7 = vadd.f32 %v525_v4, %v521_v1 }
 0x23b   : > { %444 = vst [vmem:[%s242_s8] sm:$0xff] %v442_v5  ;;  %445 = vst [vmem:[%s242_s8 + $0x8] sm:$0xff] %v443_v6 }
 0x23c   : > { %vm529_vm5 = vcmp.ge.f32.partialorder %v527_v13, 0.0  ;;  %vm530_vm6 = vcmp.ge.f32.partialorder %v528_v7, 0.0  ;;  %v531_v28 = vmul.f32 0.01, %v527_v13  ;;  %v532_v8 = vmul.f32 0.01, %v528_v7 }
 0x23e   : > { %v533_v16 = vsel %vm529_vm5, %v527_v13, %v531_v28  ;;  %v534_v9 = vsel %vm530_vm6, %v528_v7, %v532_v8 }
 0x23f   : > { %696 = vst [vmem:[%s242_s8 + $0x10] sm:$0xff] %v533_v16  ;;  %697 = vst [vmem:[%s242_s8 + $0x18] sm:$0xff] %v534_v9 }
 0x240   : > { %s705_s10 = sshll.u32 %s873_s18, 8  ;;  %s565_s11 = sshll.u32 %s242_s8, 4  ;;  %s566_s11 = int_to_ptr.vmem [resolvable:$true] %s565_s11 }
 0x241   : > { %s554_s14 = scalar_lea.hbm %s1110_s4, %s705_s10  ;;  %s887_s21 = smov 256  }
 0x242   : > { %710 = sst [smem:[#allocation7]] (%p959_p4), %s887_s21  ;;  %s888_s22 = smov 512  }
 0x243   : > { %711 = sst [smem:[#allocation7 + $0x1]] (%p959_p4), %s888_s22  ;;  %s889_s24 = smov 2  }
 0x244   : > { %712 = sst [smem:[#allocation7 + $0x2]] (%p959_p4), %s889_s24  ;;  %s890_s26 = smov 128  }
 0x245   : > { %713 = sst [smem:[#allocation7 + $0x3]] (%p959_p4), %s890_s26  ;;  %s891_s18 = smov 8  }
 0x246   : > { %714 = sst [smem:[#allocation7 + $0x4]] (%p959_p4), %s890_s26  ;;  %s892_s29 = smov 131072  }
 0x247   : > { %715 = sst [smem:[#allocation7 + $0x5]] (%p959_p4), %s891_s18  ;;  %s893_s30 = smov 0  }
 0x248   : > { %716 = dma.general (%p959_p4), %s566_s11, 512, %s554_s14, %s539_s9, %s892_s29, [#allocation7], %s893_s30, 0  }
 0x249 PF: > { %p728_p10 = scmp.ge.s32.totalorder %s881_s20, 2  ;;  %s593_s5 = sand.u32 1, %s861_s15  }
 0x24a   : > { %s594_s6 = scalar_lea.sflag [#allocation4], %s593_s5 }
 0x24b   : > { %p723_p11 = pnand %p728_p10, %p966_p8 }
 0x24d   : > { %p724_p13 = pneg %p723_p11 }
 0x24f   : > { %856 = dma.done.wait (%p724_p13), %s594_s6, 512  }
 0x250   : > { %858 = vsyncadd (%p724_p13), %s594_s6, 4294966784  ;;  %s18_s20 = sadd.s32 1, %s881_s20   ;;  %s1115_s15 = smov %s865_s16 }
 0x251   : > { %p15_p0 = scmp.ge.s32.totalorder %s18_s20, 4   ;;  %s1116_s16 = smov %s869_s17 }
 0x252   : > { %s1117_s17 = smov %s972_s28  ;;  %s1118_s18 = smov %s877_s19 }
 0x253   : > { %s1119_s19 = smov %s1121_s23  ;;  %17 = sbr.rel (!%p15_p0) target bundleno = 5 (0x5), region = 87 }
 0x258   :  { %599 = vsyncpa [#allocation3], 1 }
 0x259   :  { %601 = vsyncpa [#allocation3 + $0x1], 1 }
 0x25a   :  { %602 = vsyncpa [#allocation4], 1 }
 0x25b   :  { %604 = vsyncpa [#allocation4 + $0x1], 1 }

</bundles_post_ra>
